<compile_context>
chip_gen: v5e
topology: v5e:2x2
jax: 0.10.0
libtpu: 0.0.40
codegen_flags: <defaults>
</compile_context>

<pallas_src>
import math
import functools

import jax
import jax.numpy as jnp
from jax.experimental import pallas as pl
from jax.experimental.pallas import tpu as pltpu


def _bert_attention_kernel(
    xq_ref,        # (1, tq, H)  f32   query rows + residual
    xkv_ref,       # (1, S,  H)  bf16  full sequence (K/V source), used only at qi==0
    mask_ref,      # (1, 1, 1, S) f32  additive mask
    wq_ref, bq_ref,        # (H, H) bf16 (pre-transposed, pre-scaled), (1, H) f32
    wkv_ref, bkv_ref,      # (H, 2H) bf16 ([Wk^T | Wv^T]), (1, 2H) f32
    wo_ref, bo_ref,        # (H, H) bf16 (pre-transposed), (1, H) f32
    gamma_ref, beta_ref,   # (1, H) f32
    out_ref,       # (1, tq, H)
    kv_ref,        # (S, 2H) bf16 VMEM scratch: cached K/V projections for this batch
    ctx_ref,       # (tq, H) bf16 VMEM scratch: per-head context written in place
    *,
    num_heads: int,
    head_dim: int,
    eps: float,
):
    H = xq_ref.shape[2]
    qi = pl.program_id(1)

    # --- K/V projection: one (S,H) x (H,2H) MXU matmul, done once per batch row
    #     (the qi grid axis is "arbitrary", so the scratch persists across q-tiles).
    @pl.when(qi == 0)
    def _():
        kv = jnp.dot(xkv_ref[0], wkv_ref[...],
                     preferred_element_type=jnp.float32) + bkv_ref[...]
        kv_ref[...] = kv.astype(jnp.bfloat16)

    xq = xq_ref[0]                       # (tq, H) f32 residual
    mask = mask_ref[0, 0]                # (1, S)  f32 additive mask over keys

    # --- Q projection (1/sqrt(d) already folded into wq/bq by the wrapper) ---
    q = (jnp.dot(xq.astype(jnp.bfloat16), wq_ref[...],
                 preferred_element_type=jnp.float32)
         + bq_ref[...]).astype(jnp.bfloat16)                    # (tq, H)

    # --- per-head attention via lane slicing (no head reshape/transpose) ---
    # TODO(synk): compare a batched 3-D dot_general over heads (needs (nh,tq,d)
    # relayouts) against this unrolled lane-sliced form on v6e/v7x.
    for h in range(num_heads):
        lo = h * head_dim
        hi = lo + head_dim
        q_h = q[:, lo:hi]                # (tq, d) bf16
        k_h = kv_ref[:, lo:hi]           # (S, d)  bf16
        v_h = kv_ref[:, H + lo:H + hi]   # (S, d)  bf16

        # scores_h = q_h @ k_h^T  (contract last dims; no explicit transpose)
        s_h = jax.lax.dot_general(
            q_h, k_h, (((1,), (1,)), ((), ())),
            preferred_element_type=jnp.float32)                 # (tq, S) f32
        s_h = s_h + mask                                        # broadcast (1, S)

        # softmax over keys (f32); EUP exp + approx reciprocal (separate slots).
        m = jnp.max(s_h, axis=-1, keepdims=True)
        e = jnp.exp(s_h - m)
        p = e * pl.reciprocal(jnp.sum(e, axis=-1, keepdims=True), approx=True)
        # attention-probs dropout: identity in eval mode.

        ctx_ref[:, lo:hi] = jnp.dot(
            p.astype(jnp.bfloat16), v_h,
            preferred_element_type=jnp.float32).astype(jnp.bfloat16)

    # --- BertSelfOutput: dense + residual + LayerNorm ---
    proj = jnp.dot(ctx_ref[...], wo_ref[...],
                   preferred_element_type=jnp.float32) + bo_ref[...]
    # hidden dropout: identity in eval mode.
    y = proj + xq                        # residual in f32

    mean = jnp.mean(y, axis=-1, keepdims=True)
    d = y - mean
    var = jnp.mean(d * d, axis=-1, keepdims=True)               # centered variance
    inv = jax.lax.rsqrt(var + eps)
    out_ref[0] = (d * inv * gamma_ref[...] + beta_ref[...]).astype(out_ref.dtype)


def prepare_bert_attention_params(params, *, num_heads):
    """One-time weight preprocessing (do NOT repeat per forward call):
    transpose nn.Linear weights to (in,out), fold 1/sqrt(d) into Wq/bq,
    fuse K & V into one (H, 2H) matmul, cast weights to bf16."""
    H = params["wq"].shape[0]
    head_dim = H // num_heads
    inv_sqrt_d = 1.0 / math.sqrt(head_dim)
    as_row = lambda b: jnp.asarray(b, jnp.float32).reshape(1, H)
    return {
        "wq_t": (params["wq"].T * inv_sqrt_d).astype(jnp.bfloat16),          # (H, H)
        "bq": as_row(params["bq"]) * inv_sqrt_d,                              # (1, H)
        "wkv_t": jnp.concatenate([params["wk"].T, params["wv"].T],
                                 axis=1).astype(jnp.bfloat16),                # (H, 2H)
        "bkv": jnp.concatenate([as_row(params["bk"]), as_row(params["bv"])],
                               axis=1),                                       # (1, 2H)
        "wo_t": params["wo"].T.astype(jnp.bfloat16),                          # (H, H)
        "bo": as_row(params["bo"]),
        "gamma": as_row(params["gamma"]),
        "beta": as_row(params["beta"]),
    }


def _pick_vmem_limit_bytes(S, H, block_q, out_bytes):
    """Request roughly what the kernel needs (plus headroom), capped below the
    device's per-core VMEM capacity so Mosaic keeps room for internal scratch."""
    bf16, f32 = 2, 4
    # double-buffered streamed blocks (xq, xkv, mask, out)
    stream = 2 * (block_q * H * f32 + S * H * bf16 + S * f32 + block_q * H * out_bytes)
    # grid-invariant operands (double-buffered by the default pipeliner)
    consts = 2 * (4 * H * H * bf16 + 6 * H * f32)
    # persistent scratch: cached K/V + context
    scratch = S * 2 * H * bf16 + block_q * H * bf16
    need = stream + consts + scratch + (24 << 20)   # headroom for temps/spill
    try:
        cap = int(pltpu.get_tpu_info().vmem_capacity_bytes)
    except Exception:
        cap = 64 << 20          # conservative default: v7x per-TensorCore VMEM
    limit = max(need, 32 << 20)
    limit = min(limit, cap - (8 << 20))
    return int(limit)


def bert_attention(x, mask, prepared, *, num_heads: int, eps: float = 1e-12,
                   block_q: int | None = None, out_dtype=jnp.float32):
    """x: (B, S, H) f32, mask: (B, 1, 1, S) additive f32, prepared: see
    prepare_bert_attention_params."""
    B, S, H = x.shape
    head_dim = H // num_heads
    assert num_heads * head_dim == H

    # q-tile size: 256/128 for real BERT sequence lengths, full S otherwise.
    if block_q is None:
        if S % 256 == 0:
            block_q = 256
        elif S % 128 == 0:
            block_q = 128
        else:
            block_q = S
    assert S % block_q == 0
    num_q = S // block_q

    # K/V stream pre-cast to bf16 (halves its HBM->VMEM DMA); residual stays f32.
    x_kv = x.astype(jnp.bfloat16)

    kernel = functools.partial(
        _bert_attention_kernel,
        num_heads=num_heads, head_dim=head_dim, eps=eps,
    )

    def const_spec(shape):
        n = len(shape)
        return pl.BlockSpec(shape, lambda b, qi, _n=n: (0,) * _n)

    grid_spec = pltpu.PrefetchScalarGridSpec(
        num_scalar_prefetch=0,
        grid=(B, num_q),
        in_specs=[
            pl.BlockSpec((1, block_q, H), lambda b, qi: (b, qi, 0)),   # x (q rows, f32)
            pl.BlockSpec((1, S, H), lambda b, qi: (b, 0, 0)),          # x (full seq, bf16)
            pl.BlockSpec((1, 1, 1, S), lambda b, qi: (b, 0, 0, 0)),    # additive mask
            const_spec((H, H)), const_spec((1, H)),          # Wq^T (scaled), bq
            const_spec((H, 2 * H)), const_spec((1, 2 * H)),  # [Wk^T|Wv^T], [bk|bv]
            const_spec((H, H)), const_spec((1, H)),          # Wo^T, bo
            const_spec((1, H)), const_spec((1, H)),          # LN gamma, beta
        ],
        out_specs=pl.BlockSpec((1, block_q, H), lambda b, qi: (b, qi, 0)),
        scratch_shapes=[
            pltpu.VMEM((S, 2 * H), jnp.bfloat16),      # cached K/V for current batch
            pltpu.VMEM((block_q, H), jnp.bfloat16),    # per-head context
        ],
    )

    out_bytes = jnp.dtype(out_dtype).itemsize
    return pl.pallas_call(
        kernel,
        out_shape=jax.ShapeDtypeStruct((B, S, H), out_dtype),
        grid_spec=grid_spec,
        compiler_params=pltpu.CompilerParams(
            # batch axis split across cores (megacore / v7x 2nd TC); q-tile axis is
            # "arbitrary" because the K/V scratch carries state across q-tiles.
            dimension_semantics=("parallel", "arbitrary"),
            vmem_limit_bytes=_pick_vmem_limit_bytes(S, H, block_q, out_bytes),
        ),
    )(x, x_kv, mask,
      prepared["wq_t"], prepared["bq"],
      prepared["wkv_t"], prepared["bkv"],
      prepared["wo_t"], prepared["bo"],
      prepared["gamma"], prepared["beta"])


def _reference(x, mask, params, *, num_heads, eps=1e-12):
    """Pure-JAX f32 reference mirroring the PyTorch module (eval mode)."""
    B, S, H = x.shape
    d = H // num_heads
    lin = lambda inp, w, b: jnp.einsum("bsh,oh->bso", inp, w) + b[0]
    q = lin(x, params["wq"], params["bq"]).reshape(B, S, num_heads, d).transpose(0, 2, 1, 3)
    k = lin(x, params["wk"], params["bk"]).reshape(B, S, num_heads, d).transpose(0, 2, 1, 3)
    v = lin(x, params["wv"], params["bv"]).reshape(B, S, num_heads, d).transpose(0, 2, 1, 3)
    scores = jnp.einsum("bhqd,bhkd->bhqk", q, k) / math.sqrt(d) + mask
    probs = jax.nn.softmax(scores, axis=-1)
    ctx = jnp.einsum("bhqk,bhkd->bhqd", probs, v).transpose(0, 2, 1, 3).reshape(B, S, H)
    proj = lin(ctx, params["wo"], params["bo"])
    y = proj + x
    mean = jnp.mean(y, axis=-1, keepdims=True)
    var = jnp.mean((y - mean) ** 2, axis=-1, keepdims=True)
    return (y - mean) / jnp.sqrt(var + eps) * params["gamma"][0] + params["beta"][0]


if __name__ == "__main__":
    B, S, H, NH = 2, 8, 32, 4
    key = jax.random.PRNGKey(0)
    ks = jax.random.split(key, 12)

    scale = 0.05
    params = {
        "wq": scale * jax.random.normal(ks[0], (H, H), jnp.float32),
        "bq": scale * jax.random.normal(ks[1], (1, H), jnp.float32),
        "wk": scale * jax.random.normal(ks[2], (H, H), jnp.float32),
        "bk": scale * jax.random.normal(ks[3], (1, H), jnp.float32),
        "wv": scale * jax.random.normal(ks[4], (H, H), jnp.float32),
        "bv": scale * jax.random.normal(ks[5], (1, H), jnp.float32),
        "wo": scale * jax.random.normal(ks[6], (H, H), jnp.float32),
        "bo": scale * jax.random.normal(ks[7], (1, H), jnp.float32),
        "gamma": jnp.ones((1, H), jnp.float32),
        "beta": jnp.zeros((1, H), jnp.float32),
    }

    x = jax.random.normal(ks[8], (B, S, H), jnp.float32)
    # Standard BERT extended additive mask: 0 for attend, -10000 for masked.
    mask_bits = (jax.random.uniform(ks[9], (B, S)) > 0.2).astype(jnp.float32)
    mask = (1.0 - mask_bits)[:, None, None, :] * -10000.0  # (B, 1, 1, S)

    prepared = prepare_bert_attention_params(params, num_heads=NH)  # one-time prep
    out = bert_attention(x, mask, prepared, num_heads=NH)
    out = jax.block_until_ready(out)

    ref = _reference(x, mask, params, num_heads=NH)
    assert out.shape == (B, S, H)
    err = float(jnp.max(jnp.abs(out - ref)))
    # Kernel uses bf16 matmuls (f32 accumulation) vs. the f32 reference,
    # so tolerance is relaxed accordingly.
    assert err < 2e-2, f"max abs err {err}"

    print("KERNEL_OK")
</pallas_src>

<mosaic_0001>
module attributes {stable_mosaic.version = 11 : i64} {
  func.func @_bert_attention_kernel(%arg0: i32, %arg1: i32, %arg2: memref<1x8x32xf32, #tpu.memory_space<vmem>>, %arg3: memref<1x8x32xbf16, #tpu.memory_space<vmem>>, %arg4: memref<1x1x1x8xf32, #tpu.memory_space<vmem>>, %arg5: memref<32x32xbf16, #tpu.memory_space<vmem>>, %arg6: memref<1x32xf32, #tpu.memory_space<vmem>>, %arg7: memref<32x64xbf16, #tpu.memory_space<vmem>>, %arg8: memref<1x64xf32, #tpu.memory_space<vmem>>, %arg9: memref<32x32xbf16, #tpu.memory_space<vmem>>, %arg10: memref<1x32xf32, #tpu.memory_space<vmem>>, %arg11: memref<1x32xf32, #tpu.memory_space<vmem>>, %arg12: memref<1x32xf32, #tpu.memory_space<vmem>>, %arg13: memref<1x8x32xf32, #tpu.memory_space<vmem>>, %arg14: memref<8x64xbf16, #tpu.memory_space<vmem>>, %arg15: memref<8x32xbf16, #tpu.memory_space<vmem>>) attributes {dimension_semantics = [#tpu.dimension_semantics<parallel>, #tpu.dimension_semantics<arbitrary>], iteration_bounds = array<i64: 2, 1>, scalar_prefetch = 0 : i64, scratch_operands = 2 : i64, tpu.core_type = #tpu.core_type<tc>, window_params = [{transform_indices = @transform_0, window_bounds = array<i64: 1, 8, 32>}, {transform_indices = @transform_1, window_bounds = array<i64: 1, 8, 32>}, {transform_indices = @transform_2, window_bounds = array<i64: 1, 1, 1, 8>}, {pipeline_mode = #tpu.pipeline_mode<synchronous>, transform_indices = @transform_3, window_bounds = array<i64: 32, 32>}, {pipeline_mode = #tpu.pipeline_mode<synchronous>, transform_indices = @transform_4, window_bounds = array<i64: 1, 32>}, {pipeline_mode = #tpu.pipeline_mode<synchronous>, transform_indices = @transform_5, window_bounds = array<i64: 32, 64>}, {pipeline_mode = #tpu.pipeline_mode<synchronous>, transform_indices = @transform_6, window_bounds = array<i64: 1, 64>}, {pipeline_mode = #tpu.pipeline_mode<synchronous>, transform_indices = @transform_7, window_bounds = array<i64: 32, 32>}, {pipeline_mode = #tpu.pipeline_mode<synchronous>, transform_indices = @transform_8, window_bounds = array<i64: 1, 32>}, {pipeline_mode = #tpu.pipeline_mode<synchronous>, transform_indices = @transform_9, window_bounds = array<i64: 1, 32>}, {pipeline_mode = #tpu.pipeline_mode<synchronous>, transform_indices = @transform_10, window_bounds = array<i64: 1, 32>}, {transform_indices = @transform_11, window_bounds = array<i64: 1, 8, 32>}]} {
    %c0_i32 = arith.constant 0 : i32
    %0 = arith.cmpi eq, %arg1, %c0_i32 : i32
    %1 = arith.extui %0 : i1 to i32
    %c0_i32_0 = arith.constant 0 : i32
    %2 = arith.cmpi ne, %1, %c0_i32_0 : i32
    scf.if %2 {
      %c0_63 = arith.constant 0 : index
      %c0_64 = arith.constant 0 : index
      %c0_65 = arith.constant 0 : index
      %126 = vector.load %arg3[%c0_63, %c0_64, %c0_65] : memref<1x8x32xbf16, #tpu.memory_space<vmem>>, vector<1x8x32xbf16>
      %127 = vector.shape_cast %126 : vector<1x8x32xbf16> to vector<8x32xbf16>
      %c0_66 = arith.constant 0 : index
      %c0_67 = arith.constant 0 : index
      %128 = vector.load %arg7[%c0_66, %c0_67] : memref<32x64xbf16, #tpu.memory_space<vmem>>, vector<32x64xbf16>
      %cst_68 = arith.constant dense<0.000000e+00> : vector<8x64xf32>
      %129 = tpu.matmul %127, %128, %cst_68 {dimension_numbers = #tpu.dot_dimension_numbers<[1], [0], [0], [1], [0, 0, 1, 1], [], []>} : vector<8x32xbf16>, vector<32x64xbf16>, vector<8x64xf32> -> vector<8x64xf32>
      %c0_69 = arith.constant 0 : index
      %c0_70 = arith.constant 0 : index
      %130 = vector.load %arg8[%c0_69, %c0_70] : memref<1x64xf32, #tpu.memory_space<vmem>>, vector<1x64xf32>
      %131 = vector.broadcast %130 : vector<1x64xf32> to vector<8x64xf32>
      %132 = arith.addf %129, %131 : vector<8x64xf32>
      %133 = arith.truncf %132 : vector<8x64xf32> to vector<8x64xbf16>
      %c0_71 = arith.constant 0 : index
      %c0_72 = arith.constant 0 : index
      %134 = vector.load %arg14[%c0_71, %c0_72] : memref<8x64xbf16, #tpu.memory_space<vmem>>, vector<8x64xbf16>
      tpu.vector_store %arg14[%c0_71, %c0_72], %133 {strides = array<i32>} : memref<8x64xbf16, #tpu.memory_space<vmem>>, vector<8x64xbf16>,
    } else {
    }
    %c0 = arith.constant 0 : index
    %c0_1 = arith.constant 0 : index
    %c0_2 = arith.constant 0 : index
    %3 = vector.load %arg2[%c0, %c0_1, %c0_2] : memref<1x8x32xf32, #tpu.memory_space<vmem>>, vector<1x8x32xf32>
    %4 = vector.shape_cast %3 : vector<1x8x32xf32> to vector<8x32xf32>
    %c0_3 = arith.constant 0 : index
    %c0_4 = arith.constant 0 : index
    %c0_5 = arith.constant 0 : index
    %c0_6 = arith.constant 0 : index
    %5 = vector.load %arg4[%c0_3, %c0_4, %c0_5, %c0_6] : memref<1x1x1x8xf32, #tpu.memory_space<vmem>>, vector<1x1x1x8xf32>
    %6 = vector.shape_cast %5 : vector<1x1x1x8xf32> to vector<1x8xf32>
    %7 = arith.truncf %4 : vector<8x32xf32> to vector<8x32xbf16>
    %c0_7 = arith.constant 0 : index
    %c0_8 = arith.constant 0 : index
    %8 = vector.load %arg5[%c0_7, %c0_8] : memref<32x32xbf16, #tpu.memory_space<vmem>>, vector<32x32xbf16>
    %cst = arith.constant dense<0.000000e+00> : vector<8x32xf32>
    %9 = tpu.matmul %7, %8, %cst {dimension_numbers = #tpu.dot_dimension_numbers<[1], [0], [0], [1], [0, 0, 1, 1], [], []>} : vector<8x32xbf16>, vector<32x32xbf16>, vector<8x32xf32> -> vector<8x32xf32>
    %c0_9 = arith.constant 0 : index
    %c0_10 = arith.constant 0 : index
    %10 = vector.load %arg6[%c0_9, %c0_10] : memref<1x32xf32, #tpu.memory_space<vmem>>, vector<1x32xf32>
    %11 = vector.broadcast %10 : vector<1x32xf32> to vector<8x32xf32>
    %12 = arith.addf %9, %11 : vector<8x32xf32>
    %13 = arith.truncf %12 : vector<8x32xf32> to vector<8x32xbf16>
    %14 = vector.extract_strided_slice %13 {offsets = [0, 0], sizes = [8, 8], strides = [1, 1]} : vector<8x32xbf16> to vector<8x8xbf16>
    %c0_11 = arith.constant 0 : index
    %c0_12 = arith.constant 0 : index
    %15 = vector.load %arg14[%c0_11, %c0_12] : memref<8x64xbf16, #tpu.memory_space<vmem>>, vector<8x8xbf16>
    %c0_13 = arith.constant 0 : index
    %c32 = arith.constant 32 : index
    %16 = vector.load %arg14[%c0_13, %c32] : memref<8x64xbf16, #tpu.memory_space<vmem>>, vector<8x8xbf16>
    %cst_14 = arith.constant dense<0.000000e+00> : vector<8x8xf32>
    %17 = tpu.matmul %14, %15, %cst_14 {dimension_numbers = #tpu.dot_dimension_numbers<[1], [1], [0], [0], [0, 0, 1, 0], [], []>} : vector<8x8xbf16>, vector<8x8xbf16>, vector<8x8xf32> -> vector<8x8xf32>
    %18 = vector.broadcast %6 : vector<1x8xf32> to vector<8x8xf32>
    %19 = arith.addf %17, %18 : vector<8x8xf32>
    %cst_15 = arith.constant dense<0xFF800000> : vector<8xf32>
    %20 = vector.multi_reduction <maximumf>, %19, %cst_15 [1] : vector<8x8xf32> to vector<8xf32>
    %21 = vector.shape_cast %20 : vector<8xf32> to vector<8x1xf32>
    %22 = vector.broadcast %21 : vector<8x1xf32> to vector<8x8xf32>
    %23 = arith.subf %19, %22 : vector<8x8xf32>
    %24 = math.exp %23 : vector<8x8xf32>
    %cst_16 = arith.constant dense<0.000000e+00> : vector<8xf32>
    %25 = vector.multi_reduction <add>, %24, %cst_16 [1] : vector<8x8xf32> to vector<8xf32>
    %26 = vector.shape_cast %25 : vector<8xf32> to vector<8x1xf32>
    %27 = tpu.reciprocal %26 {approx = true} : vector<8x1xf32> -> vector<8x1xf32>
    %28 = vector.broadcast %27 : vector<8x1xf32> to vector<8x8xf32>
    %29 = arith.mulf %24, %28 : vector<8x8xf32>
    %30 = arith.truncf %29 : vector<8x8xf32> to vector<8x8xbf16>
    %cst_17 = arith.constant dense<0.000000e+00> : vector<8x8xf32>
    %31 = tpu.matmul %30, %16, %cst_17 {dimension_numbers = #tpu.dot_dimension_numbers<[1], [0], [0], [1], [0, 0, 1, 1], [], []>} : vector<8x8xbf16>, vector<8x8xbf16>, vector<8x8xf32> -> vector<8x8xf32>
    %32 = arith.truncf %31 : vector<8x8xf32> to vector<8x8xbf16>
    %c0_18 = arith.constant 0 : index
    %c0_19 = arith.constant 0 : index
    %33 = vector.load %arg15[%c0_18, %c0_19] : memref<8x32xbf16, #tpu.memory_space<vmem>>, vector<8x8xbf16>
    tpu.vector_store %arg15[%c0_18, %c0_19], %32 {strides = array<i32>} : memref<8x32xbf16, #tpu.memory_space<vmem>>, vector<8x8xbf16>,
    %34 = vector.extract_strided_slice %13 {offsets = [0, 8], sizes = [8, 8], strides = [1, 1]} : vector<8x32xbf16> to vector<8x8xbf16>
    %c0_20 = arith.constant 0 : index
    %c8 = arith.constant 8 : index
    %35 = vector.load %arg14[%c0_20, %c8] : memref<8x64xbf16, #tpu.memory_space<vmem>>, vector<8x8xbf16>
    %c0_21 = arith.constant 0 : index
    %c40 = arith.constant 40 : index
    %36 = vector.load %arg14[%c0_21, %c40] : memref<8x64xbf16, #tpu.memory_space<vmem>>, vector<8x8xbf16>
    %cst_22 = arith.constant dense<0.000000e+00> : vector<8x8xf32>
    %37 = tpu.matmul %34, %35, %cst_22 {dimension_numbers = #tpu.dot_dimension_numbers<[1], [1], [0], [0], [0, 0, 1, 0], [], []>} : vector<8x8xbf16>, vector<8x8xbf16>, vector<8x8xf32> -> vector<8x8xf32>
    %38 = vector.broadcast %6 : vector<1x8xf32> to vector<8x8xf32>
    %39 = arith.addf %37, %38 : vector<8x8xf32>
    %cst_23 = arith.constant dense<0xFF800000> : vector<8xf32>
    %40 = vector.multi_reduction <maximumf>, %39, %cst_23 [1] : vector<8x8xf32> to vector<8xf32>
    %41 = vector.shape_cast %40 : vector<8xf32> to vector<8x1xf32>
    %42 = vector.broadcast %41 : vector<8x1xf32> to vector<8x8xf32>
    %43 = arith.subf %39, %42 : vector<8x8xf32>
    %44 = math.exp %43 : vector<8x8xf32>
    %cst_24 = arith.constant dense<0.000000e+00> : vector<8xf32>
    %45 = vector.multi_reduction <add>, %44, %cst_24 [1] : vector<8x8xf32> to vector<8xf32>
    %46 = vector.shape_cast %45 : vector<8xf32> to vector<8x1xf32>
    %47 = tpu.reciprocal %46 {approx = true} : vector<8x1xf32> -> vector<8x1xf32>
    %48 = vector.broadcast %47 : vector<8x1xf32> to vector<8x8xf32>
    %49 = arith.mulf %44, %48 : vector<8x8xf32>
    %50 = arith.truncf %49 : vector<8x8xf32> to vector<8x8xbf16>
    %cst_25 = arith.constant dense<0.000000e+00> : vector<8x8xf32>
    %51 = tpu.matmul %50, %36, %cst_25 {dimension_numbers = #tpu.dot_dimension_numbers<[1], [0], [0], [1], [0, 0, 1, 1], [], []>} : vector<8x8xbf16>, vector<8x8xbf16>, vector<8x8xf32> -> vector<8x8xf32>
    %52 = arith.truncf %51 : vector<8x8xf32> to vector<8x8xbf16>
    %c0_26 = arith.constant 0 : index
    %c8_27 = arith.constant 8 : index
    %53 = vector.load %arg15[%c0_26, %c8_27] : memref<8x32xbf16, #tpu.memory_space<vmem>>, vector<8x8xbf16>
    tpu.vector_store %arg15[%c0_26, %c8_27], %52 {strides = array<i32>} : memref<8x32xbf16, #tpu.memory_space<vmem>>, vector<8x8xbf16>,
    %54 = vector.extract_strided_slice %13 {offsets = [0, 16], sizes = [8, 8], strides = [1, 1]} : vector<8x32xbf16> to vector<8x8xbf16>
    %c0_28 = arith.constant 0 : index
    %c16 = arith.constant 16 : index
    %55 = vector.load %arg14[%c0_28, %c16] : memref<8x64xbf16, #tpu.memory_space<vmem>>, vector<8x8xbf16>
    %c0_29 = arith.constant 0 : index
    %c48 = arith.constant 48 : index
    %56 = vector.load %arg14[%c0_29, %c48] : memref<8x64xbf16, #tpu.memory_space<vmem>>, vector<8x8xbf16>
    %cst_30 = arith.constant dense<0.000000e+00> : vector<8x8xf32>
    %57 = tpu.matmul %54, %55, %cst_30 {dimension_numbers = #tpu.dot_dimension_numbers<[1], [1], [0], [0], [0, 0, 1, 0], [], []>} : vector<8x8xbf16>, vector<8x8xbf16>, vector<8x8xf32> -> vector<8x8xf32>
    %58 = vector.broadcast %6 : vector<1x8xf32> to vector<8x8xf32>
    %59 = arith.addf %57, %58 : vector<8x8xf32>
    %cst_31 = arith.constant dense<0xFF800000> : vector<8xf32>
    %60 = vector.multi_reduction <maximumf>, %59, %cst_31 [1] : vector<8x8xf32> to vector<8xf32>
    %61 = vector.shape_cast %60 : vector<8xf32> to vector<8x1xf32>
    %62 = vector.broadcast %61 : vector<8x1xf32> to vector<8x8xf32>
    %63 = arith.subf %59, %62 : vector<8x8xf32>
    %64 = math.exp %63 : vector<8x8xf32>
    %cst_32 = arith.constant dense<0.000000e+00> : vector<8xf32>
    %65 = vector.multi_reduction <add>, %64, %cst_32 [1] : vector<8x8xf32> to vector<8xf32>
    %66 = vector.shape_cast %65 : vector<8xf32> to vector<8x1xf32>
    %67 = tpu.reciprocal %66 {approx = true} : vector<8x1xf32> -> vector<8x1xf32>
    %68 = vector.broadcast %67 : vector<8x1xf32> to vector<8x8xf32>
    %69 = arith.mulf %64, %68 : vector<8x8xf32>
    %70 = arith.truncf %69 : vector<8x8xf32> to vector<8x8xbf16>
    %cst_33 = arith.constant dense<0.000000e+00> : vector<8x8xf32>
    %71 = tpu.matmul %70, %56, %cst_33 {dimension_numbers = #tpu.dot_dimension_numbers<[1], [0], [0], [1], [0, 0, 1, 1], [], []>} : vector<8x8xbf16>, vector<8x8xbf16>, vector<8x8xf32> -> vector<8x8xf32>
    %72 = arith.truncf %71 : vector<8x8xf32> to vector<8x8xbf16>
    %c0_34 = arith.constant 0 : index
    %c16_35 = arith.constant 16 : index
    %73 = vector.load %arg15[%c0_34, %c16_35] : memref<8x32xbf16, #tpu.memory_space<vmem>>, vector<8x8xbf16>
    tpu.vector_store %arg15[%c0_34, %c16_35], %72 {strides = array<i32>} : memref<8x32xbf16, #tpu.memory_space<vmem>>, vector<8x8xbf16>,
    %74 = vector.extract_strided_slice %13 {offsets = [0, 24], sizes = [8, 8], strides = [1, 1]} : vector<8x32xbf16> to vector<8x8xbf16>
    %c0_36 = arith.constant 0 : index
    %c24 = arith.constant 24 : index
    %75 = vector.load %arg14[%c0_36, %c24] : memref<8x64xbf16, #tpu.memory_space<vmem>>, vector<8x8xbf16>
    %c0_37 = arith.constant 0 : index
    %c56 = arith.constant 56 : index
    %76 = vector.load %arg14[%c0_37, %c56] : memref<8x64xbf16, #tpu.memory_space<vmem>>, vector<8x8xbf16>
    %cst_38 = arith.constant dense<0.000000e+00> : vector<8x8xf32>
    %77 = tpu.matmul %74, %75, %cst_38 {dimension_numbers = #tpu.dot_dimension_numbers<[1], [1], [0], [0], [0, 0, 1, 0], [], []>} : vector<8x8xbf16>, vector<8x8xbf16>, vector<8x8xf32> -> vector<8x8xf32>
    %78 = vector.broadcast %6 : vector<1x8xf32> to vector<8x8xf32>
    %79 = arith.addf %77, %78 : vector<8x8xf32>
    %cst_39 = arith.constant dense<0xFF800000> : vector<8xf32>
    %80 = vector.multi_reduction <maximumf>, %79, %cst_39 [1] : vector<8x8xf32> to vector<8xf32>
    %81 = vector.shape_cast %80 : vector<8xf32> to vector<8x1xf32>
    %82 = vector.broadcast %81 : vector<8x1xf32> to vector<8x8xf32>
    %83 = arith.subf %79, %82 : vector<8x8xf32>
    %84 = math.exp %83 : vector<8x8xf32>
    %cst_40 = arith.constant dense<0.000000e+00> : vector<8xf32>
    %85 = vector.multi_reduction <add>, %84, %cst_40 [1] : vector<8x8xf32> to vector<8xf32>
    %86 = vector.shape_cast %85 : vector<8xf32> to vector<8x1xf32>
    %87 = tpu.reciprocal %86 {approx = true} : vector<8x1xf32> -> vector<8x1xf32>
    %88 = vector.broadcast %87 : vector<8x1xf32> to vector<8x8xf32>
    %89 = arith.mulf %84, %88 : vector<8x8xf32>
    %90 = arith.truncf %89 : vector<8x8xf32> to vector<8x8xbf16>
    %cst_41 = arith.constant dense<0.000000e+00> : vector<8x8xf32>
    %91 = tpu.matmul %90, %76, %cst_41 {dimension_numbers = #tpu.dot_dimension_numbers<[1], [0], [0], [1], [0, 0, 1, 1], [], []>} : vector<8x8xbf16>, vector<8x8xbf16>, vector<8x8xf32> -> vector<8x8xf32>
    %92 = arith.truncf %91 : vector<8x8xf32> to vector<8x8xbf16>
    %c0_42 = arith.constant 0 : index
    %c24_43 = arith.constant 24 : index
    %93 = vector.load %arg15[%c0_42, %c24_43] : memref<8x32xbf16, #tpu.memory_space<vmem>>, vector<8x8xbf16>
    tpu.vector_store %arg15[%c0_42, %c24_43], %92 {strides = array<i32>} : memref<8x32xbf16, #tpu.memory_space<vmem>>, vector<8x8xbf16>,
    %c0_44 = arith.constant 0 : index
    %c0_45 = arith.constant 0 : index
    %94 = vector.load %arg15[%c0_44, %c0_45] : memref<8x32xbf16, #tpu.memory_space<vmem>>, vector<8x32xbf16>
    %c0_46 = arith.constant 0 : index
    %c0_47 = arith.constant 0 : index
    %95 = vector.load %arg9[%c0_46, %c0_47] : memref<32x32xbf16, #tpu.memory_space<vmem>>, vector<32x32xbf16>
    %cst_48 = arith.constant dense<0.000000e+00> : vector<8x32xf32>
    %96 = tpu.matmul %94, %95, %cst_48 {dimension_numbers = #tpu.dot_dimension_numbers<[1], [0], [0], [1], [0, 0, 1, 1], [], []>} : vector<8x32xbf16>, vector<32x32xbf16>, vector<8x32xf32> -> vector<8x32xf32>
    %c0_49 = arith.constant 0 : index
    %c0_50 = arith.constant 0 : index
    %97 = vector.load %arg10[%c0_49, %c0_50] : memref<1x32xf32, #tpu.memory_space<vmem>>, vector<1x32xf32>
    %98 = vector.broadcast %97 : vector<1x32xf32> to vector<8x32xf32>
    %99 = arith.addf %96, %98 : vector<8x32xf32>
    %100 = arith.addf %99, %4 : vector<8x32xf32>
    %cst_51 = arith.constant dense<0.000000e+00> : vector<8xf32>
    %101 = vector.multi_reduction <add>, %100, %cst_51 [1] : vector<8x32xf32> to vector<8xf32>
    %102 = vector.shape_cast %101 : vector<8xf32> to vector<8x1xf32>
    %cst_52 = arith.constant 3.200000e+01 : f32
    %103 = vector.broadcast %cst_52 : f32 to vector<8x1xf32>
    %104 = arith.divf %102, %103 : vector<8x1xf32>
    %105 = vector.broadcast %104 : vector<8x1xf32> to vector<8x32xf32>
    %106 = arith.subf %100, %105 : vector<8x32xf32>
    %107 = arith.mulf %106, %106 : vector<8x32xf32>
    %cst_53 = arith.constant dense<0.000000e+00> : vector<8xf32>
    %108 = vector.multi_reduction <add>, %107, %cst_53 [1] : vector<8x32xf32> to vector<8xf32>
    %109 = vector.shape_cast %108 : vector<8xf32> to vector<8x1xf32>
    %cst_54 = arith.constant 3.200000e+01 : f32
    %110 = vector.broadcast %cst_54 : f32 to vector<8x1xf32>
    %111 = arith.divf %109, %110 : vector<8x1xf32>
    %cst_55 = arith.constant 9.99999996E-13 : f32
    %112 = vector.broadcast %cst_55 : f32 to vector<8x1xf32>
    %113 = arith.addf %111, %112 : vector<8x1xf32>
    %114 = math.rsqrt %113 : vector<8x1xf32>
    %115 = vector.broadcast %114 : vector<8x1xf32> to vector<8x32xf32>
    %116 = arith.mulf %106, %115 : vector<8x32xf32>
    %c0_56 = arith.constant 0 : index
    %c0_57 = arith.constant 0 : index
    %117 = vector.load %arg11[%c0_56, %c0_57] : memref<1x32xf32, #tpu.memory_space<vmem>>, vector<1x32xf32>
    %118 = vector.broadcast %117 : vector<1x32xf32> to vector<8x32xf32>
    %119 = arith.mulf %116, %118 : vector<8x32xf32>
    %c0_58 = arith.constant 0 : index
    %c0_59 = arith.constant 0 : index
    %120 = vector.load %arg12[%c0_58, %c0_59] : memref<1x32xf32, #tpu.memory_space<vmem>>, vector<1x32xf32>
    %121 = vector.broadcast %120 : vector<1x32xf32> to vector<8x32xf32>
    %122 = arith.addf %119, %121 : vector<8x32xf32>
    %c0_60 = arith.constant 0 : index
    %c0_61 = arith.constant 0 : index
    %c0_62 = arith.constant 0 : index
    %123 = vector.load %arg13[%c0_60, %c0_61, %c0_62] : memref<1x8x32xf32, #tpu.memory_space<vmem>>, vector<1x8x32xf32>
    %124 = vector.shape_cast %123 : vector<1x8x32xf32> to vector<8x32xf32>
    %125 = vector.shape_cast %122 : vector<8x32xf32> to vector<1x8x32xf32>
    tpu.vector_store %arg13[%c0_60, %c0_61, %c0_62], %125 {strides = array<i32>} : memref<1x8x32xf32, #tpu.memory_space<vmem>>, vector<1x8x32xf32>,
    return
  }
  func.func @transform_0(%arg0: i32, %arg1: i32) -> (i32, i32, i32) {
    %c0_i32 = arith.constant 0 : i32
    %c0_i32_0 = arith.constant 0 : i32
    return %arg0, %arg1, %c0_i32 : i32, i32, i32
  }
  func.func @transform_1(%arg0: i32, %arg1: i32) -> (i32, i32, i32) {
    %c0_i32 = arith.constant 0 : i32
    %c0_i32_0 = arith.constant 0 : i32
    %c0_i32_1 = arith.constant 0 : i32
    return %arg0, %c0_i32, %c0_i32_0 : i32, i32, i32
  }
  func.func @transform_2(%arg0: i32, %arg1: i32) -> (i32, i32, i32, i32) {
    %c0_i32 = arith.constant 0 : i32
    %c0_i32_0 = arith.constant 0 : i32
    %c0_i32_1 = arith.constant 0 : i32
    %c0_i32_2 = arith.constant 0 : i32
    return %arg0, %c0_i32, %c0_i32_0, %c0_i32_1 : i32, i32, i32, i32
  }
  func.func @transform_3(%arg0: i32, %arg1: i32) -> (i32, i32) {
    %c0_i32 = arith.constant 0 : i32
    %c0_i32_0 = arith.constant 0 : i32
    %c0_i32_1 = arith.constant 0 : i32
    return %c0_i32, %c0_i32_0 : i32, i32
  }
  func.func @transform_4(%arg0: i32, %arg1: i32) -> (i32, i32) {
    %c0_i32 = arith.constant 0 : i32
    %c0_i32_0 = arith.constant 0 : i32
    %c0_i32_1 = arith.constant 0 : i32
    return %c0_i32, %c0_i32_0 : i32, i32
  }
  func.func @transform_5(%arg0: i32, %arg1: i32) -> (i32, i32) {
    %c0_i32 = arith.constant 0 : i32
    %c0_i32_0 = arith.constant 0 : i32
    %c0_i32_1 = arith.constant 0 : i32
    return %c0_i32, %c0_i32_0 : i32, i32
  }
  func.func @transform_6(%arg0: i32, %arg1: i32) -> (i32, i32) {
    %c0_i32 = arith.constant 0 : i32
    %c0_i32_0 = arith.constant 0 : i32
    %c0_i32_1 = arith.constant 0 : i32
    return %c0_i32, %c0_i32_0 : i32, i32
  }
  func.func @transform_7(%arg0: i32, %arg1: i32) -> (i32, i32) {
    %c0_i32 = arith.constant 0 : i32
    %c0_i32_0 = arith.constant 0 : i32
    %c0_i32_1 = arith.constant 0 : i32
    return %c0_i32, %c0_i32_0 : i32, i32
  }
  func.func @transform_8(%arg0: i32, %arg1: i32) -> (i32, i32) {
    %c0_i32 = arith.constant 0 : i32
    %c0_i32_0 = arith.constant 0 : i32
    %c0_i32_1 = arith.constant 0 : i32
    return %c0_i32, %c0_i32_0 : i32, i32
  }
  func.func @transform_9(%arg0: i32, %arg1: i32) -> (i32, i32) {
    %c0_i32 = arith.constant 0 : i32
    %c0_i32_0 = arith.constant 0 : i32
    %c0_i32_1 = arith.constant 0 : i32
    return %c0_i32, %c0_i32_0 : i32, i32
  }
  func.func @transform_10(%arg0: i32, %arg1: i32) -> (i32, i32) {
    %c0_i32 = arith.constant 0 : i32
    %c0_i32_0 = arith.constant 0 : i32
    %c0_i32_1 = arith.constant 0 : i32
    return %c0_i32, %c0_i32_0 : i32, i32
  }
  func.func @transform_11(%arg0: i32, %arg1: i32) -> (i32, i32, i32) {
    %c0_i32 = arith.constant 0 : i32
    %c0_i32_0 = arith.constant 0 : i32
    return %arg0, %arg1, %c0_i32 : i32, i32, i32
  }
}

</mosaic_0001>

<bundles_post_ra>
// kernel: tpu_custom_call.1
= control target key start
LH: loop header
LB: loop body
LE: loop exit
PB: predicated region body
PF: predicated region fallthrough
CT: control target
= control target key end

     0   :  { %s1965_s0 = inlined_call_operand.hbm [shape: f32[2,8,32], index: 0, kind: input, shape index: {}]   ;;  %s1966_s1 = inlined_call_operand.hbm [shape: bf16[2,8,32], index: 1, kind: input, shape index: {}]   ;;  %s1967_s2 = inlined_call_operand.hbm [shape: f32[2,1,1,8], index: 2, kind: input, shape index: {}]   ;;  %s1968_s3 = inlined_call_operand.hbm [shape: bf16[32,32], index: 3, kind: input, shape index: {}]   ;;  %s1969_s4 = inlined_call_operand.vmem [shape: f32[1,32], index: 4, kind: input, shape index: {}]   ;;  %s1970_s5 = inlined_call_operand.hbm [shape: bf16[32,64], index: 5, kind: input, shape index: {}]   ;;  %s1971_s6 = inlined_call_operand.vmem [shape: f32[1,64], index: 6, kind: input, shape index: {}]   ;;  %s1972_s7 = inlined_call_operand.hbm [shape: bf16[32,32], index: 7, kind: input, shape index: {}]   ;;  %s1973_s8 = inlined_call_operand.vmem [shape: f32[1,32], index: 8, kind: input, shape index: {}]   ;;  %s1974_s9 = inlined_call_operand.vmem [shape: f32[1,32], index: 9, kind: input, shape index: {}]   ;;  %s1975_s10 = inlined_call_operand.vmem [shape: f32[1,32], index: 10, kind: input, shape index: {}]   ;;  %s1976_s11 = inlined_call_operand.hbm [shape: f32[2,8,32], index: 11, kind: output, shape index: {}]  }
   0x1   :  { %1990 = sst [smem:[#allocation28_spill]] %s1966_s1 }
   0x2   :  { %1991 = sst [smem:[#allocation29_spill]] %s1968_s3 }
   0x3   :  { %1992 = sst [smem:[#allocation30_spill]] %s1970_s5 }
   0x4   :  { %1993 = sst [smem:[#allocation31_spill]] %s1972_s7 }
   0x5   :  { %1994 = sst [smem:[#allocation32_spill]] %s1975_s10 }
   0x6   :  { %1995 = sst [smem:[#allocation33_spill]] %s1976_s11 }
   0x7   :  { %16 = vsyncpa [#allocation5], 0 }
   0x8   :  { %18 = vsyncpa [#allocation5 + $0x1], 0 }
   0x9   :  { %19 = vsyncpa [#allocation8], 0 }
   0xa   :  { %21 = vsyncpa [#allocation8 + $0x1], 0 }
   0xb   :  { %22 = vsyncpa [#allocation11], 0 }
   0xc   :  { %23 = vsyncpa [#allocation14], 0 }
   0xd   :  { %24 = vsyncpa [#allocation6], 0 }
   0xe   :  { %26 = vsyncpa [#allocation6 + $0x1], 0  ;;  %s1697_s17 = smov 0   ;;  %s1699_s18 = smov 0  }
   0xf   :  { %s1701_s19 = smov 0   ;;  %s1703_s20 = smov 0  }
  0x10   :  { %s1705_s21 = smov 0   ;;  %s1707_s22 = smov 0  }
  0x11 LB: > { %1996 = sst [smem:[#allocation21_spill]] %s1599_s17  ;;  %s1728_s23 = sadd.s32 4294967295, %s1619_s22   ;;  %s1619_s22 = sphi %s1707_s22, %s32_s22   ;;  %s1615_s21 = sphi %s1705_s21, %s2028_s21   ;;  %s1611_s20 = sphi %s1703_s20, %s2027_s20   ;;  %s1607_s19 = sphi %s1701_s19, %s2023_s19   ;;  %s1603_s18 = sphi %s1699_s18, %s2026_s18   ;;  %s1599_s17 = sphi %s1697_s17, %s2025_s17  }
  0x12   : > { %1997 = sst [smem:[#allocation22_spill]] %s1607_s19  ;;  %p1142_p0 = scmp.ge.s32.totalorder %s1619_s22, 1 }
  0x13   : > { %1998 = sst [smem:[#allocation23_spill]] %s1619_s22  ;;  %p67_p1 = scmp.eq.s32.totalorder %s1728_s23, 0 }
  0x14   : > { %p325_p2 = scmp.lt.s32.totalorder %s1619_s22, 3  ;;  %s1999_s3 = sld [smem:[#allocation29_spill]] }
  0x15   : > { %s1621_s28 = smov [#allocation10]   ;;  %s1977_s12 = smov 64  }
  0x16   : > { %p1736_p3 = pnand %p1142_p0, %p325_p2  ;;  %s338_s29 = sshll.u32 %s1621_s28, 4  ;;  %s339_s29 = int_to_ptr.vmem [resolvable:$true] %s338_s29 }
  0x17   : > { %s1979_s13 = smov 4   ;;  %s1141_s14 = sadd.s32 4294967294, %s1619_s22  }
  0x18   : > { %p1223_p4 = pneg %p1736_p3  ;;  %s44_s15 = sadd.s32 1, %s1615_s21 }
  0x19   : > { %s53_s16 = sadd.s32 1, %s1607_s19  ;;  %p46_p7 = scmp.ge.s32.totalorder %s44_s15, 2 }
  0x1a   : > { %s336_s26 = sshll.u32 %s1999_s3, 4  ;;  %p1744_p5 = pnand %p1223_p4, %p67_p1  ;;  %s337_s26 = int_to_ptr.hbm [resolvable:$true] %s336_s26 }
  0x1b   : > { %p60_p8 = scmp.ne.s32.totalorder %s1607_s19, %s1603_s18  ;;  %p61_p9 = scmp.eq.s32.totalorder %s1619_s22, 0 }
  0x1c   : > { %1226 = dma.hbm_to_vmem [thread:$0]  (!%p1744_p5), %s337_s26, 256, %s339_s29, [#allocation11], %s1977_s12, %s1977_s12, %s1979_s13  }
  0x1d   : > { %p66_p10 = scmp.ne.s32.totalorder %s1603_s18, %s1599_s17  ;;  %s2030_s15 = smov (%p46_p7, %s44_s15), 0 }
  0x1e   : > { %2002 = sst [smem:[#allocation24_spill]] %s2030_s15  ;;  %p62_p11 = por %p61_p9, %p60_p8 }
  0x1f   : > { %p1766_p12 = por %p67_p1, %p66_p10  ;;  %s48_s25 = ssub.s32 %s1615_s21, %s2030_s15 }
  0x20   : > { %p312_p13 = scmp.eq.s32.totalorder %s1728_s23, 1  ;;  %p51_p0 = scmp.eq.s32.totalorder %s48_s25, 0 }
  0x21   : > { %p318_p2 = scmp.eq.s32.totalorder %s1141_s14, 1  ;;  %p1250_p6 = scmp.lt.s32.totalorder %s1619_s22, 2 }
  0x22   : > { %p1773_p4 = por %p312_p13, %p60_p8  ;;  %s1786_s12 = sand.u32 1, %s1607_s19  }
  0x23   : > { %s1779_s28 = scalar_select %p51_p0, %s1607_s19, %s53_s16  }
  0x24   : > { %s2004_s26 = scalar_select %p1773_p4, 1, 0 }
  0x25   : > { %2006 = sst [smem:[#allocation26_spill]] %s1779_s28  ;;  %p1781_p7 = por %p318_p2, %p66_p10 }
  0x26   : > { %2005 = sst [smem:[#allocation25_spill]] %s2004_s26  ;;  %p1788_p9 = pnand %p1250_p6, %p62_p11 }
  0x27   : > { %s2007_s29 = scalar_select %p1781_p7, 1, 0 }
  0x28   : > { %s415_s14 = sand.u32 1, %s1619_s22   ;;  %s1149_s25 = sshll.u32 %s1786_s12, 2 }
  0x29   : > { %2008 = sst [smem:[#allocation27_spill]] %s2007_s29  ;;  %s1150_s3 = sshll.u32 %s1615_s21, 2 }
  0x2a   : > { %s419_s15 = scalar_lea.vmem [#allocation7], %s1149_s25  ;;  %s2010_s1 = sld [smem:[#allocation28_spill]] }
  0x2b   : > { %s427_s17 = sshll.u32 %s419_s15, 4  ;;  %s2011_s5 = sld [smem:[#allocation30_spill]]  ;;  %s428_s17 = int_to_ptr.vmem [resolvable:$true] %s427_s17 }
  0x2c   : > { %s1801_s22 = scalar_lea.sflag [#allocation8], %s415_s14  ;;  %s2012_s7 = sld [smem:[#allocation31_spill]] }
  0x2d   : > { %s1624_s28 = smov [#allocation12]   ;;  %s2014_s26 = smov 64  }
  0x2e   : > { %s355_s16 = sshll.u32 %s1624_s28, 4  ;;  %s1625_s29 = smov [#allocation13]   ;;  %s356_s16 = int_to_ptr.vmem [resolvable:$true] %s355_s16 }
  0x2f   : > { %s372_s14 = sshll.u32 %s1625_s29, 4  ;;  %s373_s14 = int_to_ptr.vmem [resolvable:$true] %s372_s14 }
  0x30   : > { %s423_s10 = scalar_lea.hbm %s2010_s1, %s1150_s3 }
  0x31   : > { %s425_s19 = sshll.u32 %s423_s10, 4  ;;  %s353_s11 = sshll.u32 %s2011_s5, 4  ;;  %s426_s19 = int_to_ptr.hbm [resolvable:$true] %s425_s19  ;;  %s354_s11 = int_to_ptr.hbm [resolvable:$true] %s353_s11 }
  0x32   : > { %1239 = dma.hbm_to_vmem [thread:$0]  (!%p1788_p9), %s426_s19, 64, %s428_s17, %s1801_s22  }
  0x33   : > { %s370_s3 = sshll.u32 %s2012_s7, 4  ;;  %s2013_s10 = smov 4   ;;  %s371_s3 = int_to_ptr.hbm [resolvable:$true] %s370_s3 }
  0x34   : > { %1229 = dma.hbm_to_vmem [thread:$0]  (!%p1744_p5), %s354_s11, 256, %s356_s16, [#allocation11], %s2014_s26, %s2014_s26, %s2013_s10  }
  0x35   : > { %s1147_s17 = sshll.u32 %s1786_s12, 3  ;;  %s1148_s19 = sshll.u32 %s1615_s21, 3 }
  0x36   : > { %1232 = dma.hbm_to_vmem [thread:$0]  (!%p1744_p5), %s371_s3, 256, %s373_s14, [#allocation14], %s2014_s26, %s2014_s26, %s2013_s10  }
  0x37   : > { %s404_s28 = scalar_lea.hbm %s1965_s0, %s1148_s19  ;;  %s399_s1 = scalar_lea.vmem [#allocation4], %s1147_s17 }
  0x38   : > { %s408_s5 = sshll.u32 %s399_s1, 4  ;;  %s406_s11 = sshll.u32 %s404_s28, 4  ;;  %s409_s5 = int_to_ptr.vmem [resolvable:$true] %s408_s5  ;;  %s407_s11 = int_to_ptr.hbm [resolvable:$true] %s406_s11 }
  0x39   : > { %s396_s16 = scalar_lea.sflag [#allocation5], %s1786_s12  ;;  %s440_s7 = scalar_lea.hbm %s1967_s2, %s1615_s21 }
  0x3a   : > { %1236 = dma.hbm_to_vmem [thread:$0]  (!%p1788_p9), %s407_s11, 128, %s409_s5, %s396_s16  }
  0x3b   : > { %s437_s3 = scalar_lea.vmem [#allocation9], %s1786_s12  ;;  %s442_s26 = sshll.u32 %s440_s7, 4  ;;  %s443_s26 = int_to_ptr.hbm [resolvable:$true] %s442_s26 }
  0x3c   : > { %s444_s10 = sshll.u32 %s437_s3, 4  ;;  %453 = sbr.rel (%p1736_p3) target bundleno = 1684 (0x694), region = 64  ;;  %s445_s10 = int_to_ptr.vmem [resolvable:$true] %s444_s10 }
  0x3d   : > { %1242 = dma.hbm_to_vmem [thread:$0]  (!%p1788_p9), %s443_s26, 16, %s445_s10, %s1801_s22  }
  0x3e   : > { %s1838_s1 = sand.u32 (!%p1736_p3), 1, %s1603_s18  }
  0x3f   : > { %s1152_s5 = sshll.u32 (!%p1736_p3), %s1838_s1, 3  ;;  %s456_s14 = scalar_lea.sflag (!%p1736_p3), [#allocation5], %s1838_s1 }
  0x40   : > { %s459_s12 = scalar_lea.vmem (!%p1736_p3), [#allocation4], %s1152_s5 }
  0x41   : > { %1578 = dma.done.wait (%p1766_p12), %s456_s14, 128  }
  0x42   : > { %1580 = vsyncadd (%p1766_p12), %s456_s14, 4294967168  ;;  %s465_s7 = sand.u32 1, %s1728_s23   ;;  %s1153_s22 = sshll.u32 %s1838_s1, 2 }
  0x43   : > { %s466_s27 = scalar_lea.sflag [#allocation8], %s465_s7  ;;  %s469_s13 = scalar_lea.vmem [#allocation7], %s1153_s22 }
  0x44   : > { %1582 = dma.done.wait (%p1766_p12), %s466_s27, 80  }
  0x45   : > { %1584 = vsyncadd (%p1766_p12), %s466_s27, 4294967216  ;;  %s478_s17 = scalar_lea.vmem [#allocation9], %s1838_s1 }
  0x46   : > { %1586 = dma.done.wait (%p67_p1), [#allocation11], 512  }
  0x47   : > { %1588 = vsyncadd (%p67_p1), [#allocation11], 4294966784 }
  0x48   : > { %1590 = dma.done.wait (%p67_p1), [#allocation14], 256  }
  0x49   : > { %1592 = vsyncadd (%p67_p1), [#allocation14], 4294967040  ;;  %v1198_v0 = vld [vmem:[#allocation12 + $0x8] sm:$0xff]  ;;  %v1200_v1 = vld [vmem:[#allocation10 + $0x8] sm:$0xff]  ;;  %vm568_vm0 = vcmask 261120   ;;  %vm586_vm1 = vcmask 519168  }
  0x4a   : > { %v1197_v2 = vld [vmem:[#allocation12] sm:$0xff]  ;;  %v1199_v3 = vld [vmem:[#allocation10] sm:$0xff]  ;;  %578 = vmatpush.bf16.msra.mxu0 %v1198_v0  ;;  %621 = vmatpush.bf16.msra.mxu1 %v1200_v1  ;;  %v1319_v7 = vld [vmem:[%s1971_s6] ss:$0 sm:$0xff]  ;;  %s1626_s25 = smov 120   ;;  %vm633_vm2 = vcmask 64512  }
  0x4b   : > { %v1863_v4 = vld [vmem:[%s459_s12] sm:$0xff]  ;;  %v547_v6 = vld [vmem:[%s469_s13] sm:$0xf]  ;;  %v1320_v8 = vld [vmem:[%s1969_s4] ss:$0 sm:$0xff]  ;;  %s1627_s28 = smov 112  }
  0x4c   : > { %v590_v5 = vpack.c.bf16 %v1863_v4, %v1863_v4  ;;  %s1628_s11 = smov 96   ;;  %s1629_s16 = smov 104   ;;  %vm673_vm3 = vcmask 1043456   ;;  %v1321_v37 = vld [vmem:[%s478_s17] ss:$0 sm:$0xff]  ;;  %vm691_vm4 = vcmask 60416  }
  0x4d   : > { %s1630_s30 = smov 88   ;;  %s1631_s29 = smov 80   ;;  %vm761_vm5 = vcmask 126016   ;;  %vm828_vm6 = vcmask 191616   ;;  %vm895_vm7 = vcmask 257216  }
  0x4e   : > { %579 = vmatpush.bf16.msra.mxu0 %v1197_v2  ;;  %622 = vmatpush.bf16.msra.mxu1 %v1199_v3  ;;  %s1632_s3 = smov 72   ;;  %s1633_s10 = smov 8  }
  0x4f   : > { %s1634_s26 = smov 16   ;;  %s1635_s14 = smov 24  }
  0x50   : > { %s1194_s22 = sshll.u32 %s1611_s20, 3  ;;  %s2015_s24 = sld [smem:[#allocation33_spill]] }
  0x51   : > { %1166 = vmatmul.msk.bf16.vlgmr.msra.gmra.mxu0 %vm568_vm0, %v547_v6  ;;  %1175 = vmatmul.msk.bf16.vlgmr.msra.gmra.mxu1 %vm568_vm0, %v590_v5  ;;  %s541_s20 = scalar_lea.vmem [#allocation15], %s1152_s5 }
  0x56   : > { %s987_s19 = scalar_lea.hbm %s2015_s24, %s1194_s22  ;;  %s1545_s5 = scalar_lea.hbm %s2015_s24, 16 }
  0xce   : > { %v581_v9 = vpop.f32.mrf.mxu0  ;;  %v624_v10 = vpop.f32.mrf.mxu1 }
  0xcf   : > { %v582_v11 = vadd.f32 %v1319_v7, %v581_v9  ;;  %v625_v12 = vadd.f32 %v1320_v8, %v624_v10 }
  0xd1   : > { %v585_v13 = vpack.c.bf16 %v582_v11, %v582_v11  ;;  %v628_v14 = vpack.c.bf16 %v625_v12, %v625_v12 }
  0xd3   : > { %587 = vst.msk [vmem:[#allocation2] sm:$0xf] %vm586_vm1, %v585_v13  ;;  %v695_v15 = vunpack.c.l.b16 %v628_v14 }
  0xd5   : > { %v696_v16 = vpack.c.b16 %v695_v15, %v695_v15 }
  0xd6   : > { %v583_v17 = vpop.f32.mrf.mxu0  ;;  %v626_v18 = vpop.f32.mrf.mxu1 }
  0xd7   : > { %697 = vrot.lane.b32.xlu2 %v696_v16, %s1626_s25 }
  0xda   : > { %v629_v19 = vld [vmem:[#allocation2] sm:$0xf] }
  0xdb   : > { %v763_v20 = vld [vmem:[#allocation2] sm:$0xf]  ;;  %v638_v21 = vsel %vm633_vm2, %v629_v19, 0  ;;  %v666_v22 = vunpack.c.l.b16 %v629_v19 }
  0xdc   : > { %v767_v23 = vunpack.c.l.b16 %v763_v20  ;;  %647 = vmatpush.bf16.xpose.msra.mxu2 %v638_v21  ;;  %v693_v26 = vld [vmem:[#allocation2] sm:$0xf] }
  0xdd   : > { %v667_v25 = vpack.c.b16 %v666_v22, %v666_v22  ;;  %v700_v27 = vunpack.c.l.b16 %v693_v26  ;;  %v830_v51 = vld [vmem:[#allocation2] sm:$0xf] }
  0xde   : > { %v1876_v24 = vpack.c.b16 %v767_v23, %v767_v23  ;;  %v834_v52 = vunpack.c.l.b16 %v830_v51  ;;  %v1202_v51 = vld [vmem:[#allocation13 + $0x8] sm:$0xff] }
  0xdf   : > { %668 = vrot.lane.b32.xlu1 %v667_v25, %s1628_s11  ;;  %v1880_v28 = vpack.c.b16 %v700_v27, %v700_v27  ;;  %s2017_s11 = sld [smem:[#allocation32_spill]] }
  0xe0   : > { %769 = vrot.lane.b32.xlu2 %v1876_v24, %s1627_s28  ;;  %v835_v53 = vpack.c.b16 %v834_v52, %v834_v52  ;;  %v1201_v52 = vld [vmem:[#allocation13] sm:$0xff] }
  0xe3   : > { %1176 = vmatmul.msk.bf16.vlgmr.msra.gmra.mxu2 %vm633_vm2, %v628_v14 }
  0xe7   : > { %702 = vrot.lane.b32.xlu1 %v1880_v28, %s1626_s25 }
  0xe8   : > { %831 = vrot.lane.b32.xlu2 %v696_v16, %s1629_s16 }
  0xef   : > { %764 = vrot.lane.b32.xlu1 %v696_v16, %s1627_s28 }
 0x131   : > { %v698_v29 = vpop.permute.xlu2 %697 }
 0x13a   : > { %v770_v30 = vpop.permute.xlu2 %769 }
 0x13b   : > { %v775_v31 = vsel %vm633_vm2, %v770_v30, 0 }
 0x13c   : > { %784 = vmatpush.bf16.xpose.msrb.mxu1 %v775_v31 }
 0x142   : > { %v832_v54 = vpop.permute.xlu2 %831 }
 0x144   : > { %927 = vmatpush.bf16.msra.mxu1 %v1202_v51 }
 0x148   : > { %928 = vmatpush.bf16.msra.mxu1 %v1201_v52 }
 0x151   : > { %v669_v32 = vpop.permute.xlu1 %668 }
 0x152   : > { %v675_v33 = vsel %vm673_vm3, %v669_v32, 0 }
 0x153   : > { %684 = vmatpush.bf16.msra.mxu3 %v675_v33 }
 0x159   : > { %v703_v34 = vpop.permute.xlu1 %702 }
 0x15a   : > { %v708_v35 = vsel %vm633_vm2, %v703_v34, 0 }
 0x15b   : > { %717 = vmatpush.bf16.xpose.msrb.mxu3 %v708_v35 }
 0x161   : > { %v765_v36 = vpop.permute.xlu1 %764 }
 0x162   : > { %1180 = vmatmul.msk.bf16.vlgmr.msrb.gmra.mxu1 %vm633_vm2, %v765_v36 }
 0x166   : > { %v649_v38 = vpop.f32.mrf.mxu2 }
 0x167   : > { %v650_v39 = vadd.f32 %v1321_v37, %v649_v38 }
 0x169   : > { %v653_v40 = vsel %vm633_vm2, %v650_v39, -inf }
 0x16a   : > { %654 = vmax.xlane.f32.xlu0 %v653_v40 }
 0x16e   : > { %v651_v41 = vpop.f32.mrf.mxu2 }
 0x1dd   : > { %v655_v42 = vpop.xlane.xlu0 %654 }
 0x1de   : > { %v656_v43 = vsub.f32 %v650_v39, %v655_v42 }
 0x1df   : > { %v786_v44 = vpop.f32.mrf.mxu1 }
 0x1e0   : > { %v657_v45 = vmul.f32 1.442695, %v656_v43  ;;  %v787_v46 = vadd.f32 %v1321_v37, %v786_v44 }
 0x1e2   : > { %1325 = vpow2.f32 %v657_v45  ;;  %v790_v47 = vsel %vm633_vm2, %v787_v46, -inf }
 0x1e3   : > { %791 = vmax.xlane.f32.xlu2 %v790_v47 }
 0x1e7   : > { %v788_v48 = vpop.f32.mrf.mxu1 }
 0x1e8   : > { %v1326_v49 = vpop.eup %1325 }
 0x1e9   : > { %v659_v50 = vsel %vm633_vm2, %v1326_v49, 0.0 }
 0x1ea   : > { %660 = vadd.xlane.f32.xlu0 %v659_v50 }
 0x1fe   : > { %836 = vrot.lane.b32.xlu0 %v835_v53, %s1629_s16  ;;  %s989_s16 = sshll.u32 %s541_s20, 4  ;;  %s990_s16 = int_to_ptr.vmem [resolvable:$true] %s989_s16 }
 0x256   : > { %v792_v55 = vpop.xlane.xlu2 %791 }
 0x257   : > { %v793_v56 = vsub.f32 %v787_v46, %v792_v55 }
 0x259   : > { %v794_v57 = vmul.f32 1.442695, %v793_v56 }
 0x25b   : > { %1327 = vpow2.f32 %v794_v57  ;;  %v1322_v57 = vld [vmem:[%s1973_s8] ss:$0 sm:$0xff] }
 0x25d   : > { %v661_v58 = vpop.xlane.xlu0 %660 }
 0x25e   : > { %1329 = vrcp.f32 %v661_v58 }
 0x261   : > { %v1328_v59 = vpop.eup %1327 }
 0x262   : > { %v796_v60 = vsel %vm633_vm2, %v1328_v59, 0.0 }
 0x263   : > { %797 = vadd.xlane.f32.xlu2 %v796_v60 }
 0x264   : > { %v1330_v61 = vpop.eup %1329 }
 0x265   : > { %v663_v62 = vmul.f32 %v1330_v61, %v1326_v49 }
 0x267   : > { %v664_v63 = vpack.c.bf16 %v663_v62, %v663_v62 }
 0x269   : > { %1177 = vmatmul.msk.bf16.vlgmr.msra.gmra.mxu3 %vm633_vm2, %v664_v63  ;;  %v1636_v63 = vmov 32.0  }
 0x270   : > { %v837_v0 = vpop.permute.xlu0 %836 }
 0x271   : > { %v842_v1 = vsel %vm633_vm2, %v837_v0, 0 }
 0x272   : > { %851 = vmatpush.bf16.xpose.msra.mxu3 %v842_v1 }
 0x279   : > { %1178 = vmatmul.msk.bf16.vlgmr.msrb.gmra.mxu3 %vm633_vm2, %v698_v29 }
 0x289   : > { %1182 = vmatmul.msk.bf16.vlgmr.msra.gmra.mxu3 %vm633_vm2, %v832_v54 }
 0x2d6   : > { %v798_v27 = vpop.xlane.xlu2 %797 }
 0x2ec   : > { %v686_v2 = vpop.f32.mrf.mxu3 }
 0x2ed   : > { %v690_v3 = vpack.c.bf16 %v686_v2, %v686_v2 }
 0x2ef   : > { %692 = vst.msk [vmem:[#allocation3] sm:$0xf] %vm691_vm4, %v690_v3 }
 0x2f4   : > { %v688_v5 = vpop.f32.mrf.mxu3 }
 0x2fc   : > { %v719_v6 = vpop.f32.mrf.mxu3 }
 0x2fd   : > { %v720_v7 = vadd.f32 %v1321_v37, %v719_v6 }
 0x2ff   : > { %v723_v8 = vsel %vm633_vm2, %v720_v7, -inf }
 0x300   : > { %724 = vmax.xlane.f32.xlu1 %v723_v8 }
 0x304   : > { %v721_v9 = vpop.f32.mrf.mxu3 }
 0x30c   : > { %v853_v10 = vpop.f32.mrf.mxu3 }
 0x30d   : > { %v854_v11 = vadd.f32 %v1321_v37, %v853_v10 }
 0x30f   : > { %v857_v12 = vsel %vm633_vm2, %v854_v11, -inf }
 0x310   : > { %858 = vmax.xlane.f32.xlu0 %v857_v12 }
 0x314   : > { %v855_v13 = vpop.f32.mrf.mxu3 }
 0x319   : > { %735 = vrot.lane.b32.xlu1 %v1880_v28, %s1630_s30  ;;  %s991_s30 = sshll.u32 %s987_s19, 4  ;;  %s992_s30 = int_to_ptr.hbm [resolvable:$true] %s991_s30 }
 0x373   : > { %v725_v14 = vpop.xlane.xlu1 %724 }
 0x374   : > { %v726_v15 = vsub.f32 %v720_v7, %v725_v14 }
 0x376   : > { %v727_v16 = vmul.f32 1.442695, %v726_v15 }
 0x378   : > { %1331 = vpow2.f32 %v727_v16 }
 0x37e   : > { %v1332_v17 = vpop.eup %1331 }
 0x37f   : > { %v729_v18 = vsel %vm633_vm2, %v1332_v17, 0.0 }
 0x380   : > { %730 = vadd.xlane.f32.xlu2 %v729_v18 }
 0x383   : > { %v859_v19 = vpop.xlane.xlu0 %858 }
 0x384   : > { %v860_v20 = vsub.f32 %v854_v11, %v859_v19 }
 0x386   : > { %v861_v21 = vmul.f32 1.442695, %v860_v20  ;;  %v1323_v20 = vld [vmem:[%s1974_s9] ss:$0 sm:$0xff] }
 0x388   : > { %1333 = vpow2.f32 %v861_v21 }
 0x389   : > { %1335 = vrcp.f32 %v798_v27 }
 0x38b   : > { %v736_v22 = vpop.permute.xlu1 %735 }
 0x38c   : > { %v741_v23 = vsel %vm673_vm3, %v736_v22, 0 }
 0x38d   : > { %750 = vmatpush.bf16.msrb.mxu0 %v741_v23  ;;  %v1324_v23 = vld [vmem:[%s2017_s11] ss:$0 sm:$0xff] }
 0x38e   : > { %v1334_v25 = vpop.eup %1333 }
 0x38f   : > { %v863_v26 = vsel %vm633_vm2, %v1334_v25, 0.0  ;;  %v1336_v29 = vpop.eup %1335 }
 0x390   : > { %864 = vadd.xlane.f32.xlu0 %v863_v26  ;;  %v800_v31 = vmul.f32 %v1336_v29, %v1328_v59 }
 0x392   : > { %v801_v36 = vpack.c.bf16 %v800_v31, %v800_v31 }
 0x398   : > { %802 = vrot.lane.b32.xlu2 %v1876_v24, %s1631_s29  ;;  %s976_s29 = scalar_lea.sflag [#allocation6], %s1838_s1 }
 0x3a4   : > { %869 = vrot.lane.b32.xlu0 %v835_v53, %s1632_s3  ;;  %s1539_s3 = sshra.s32 %s992_s30, 4  ;;  %s1540_s3 = int_to_ptr.hbm [resolvable:$true] %s1539_s3 }
 0x3a5   : > { %p1546_p6 = scmp.lt.s32.totalorder %s1540_s3, %s2015_s24 }
 0x3f3   : > { %v731_v28 = vpop.xlane.xlu2 %730 }
 0x3f4   : > { %1337 = vrcp.f32 %v731_v28 }
 0x3fa   : > { %v1338_v30 = vpop.eup %1337 }
 0x3fb   : > { %v733_v32 = vmul.f32 %v1338_v30, %v1332_v17  ;;  %v803_v33 = vpop.permute.xlu2 %802 }
 0x3fc   : > { %v808_v34 = vsel %vm673_vm3, %v803_v33, 0 }
 0x3fd   : > { %817 = vmatpush.bf16.msrb.mxu2 %v808_v34  ;;  %v734_v35 = vpack.c.bf16 %v733_v32, %v733_v32 }
 0x3ff   : > { %1179 = vmatmul.msk.bf16.vlgmr.msrb.gmra.mxu0 %vm633_vm2, %v734_v35 }
 0x400   : > { %1181 = vmatmul.msk.bf16.vlgmr.msrb.gmra.mxu2 %vm633_vm2, %v801_v36 }
 0x403   : > { %v865_v24 = vpop.xlane.xlu0 %864 }
 0x404   : > { %1339 = vrcp.f32 %v865_v24 }
 0x405   : > { %1341 = vrcp.f32 %v1636_v63 }
 0x40a   : > { %v1340_v37 = vpop.eup %1339 }
 0x40b   : > { %v867_v38 = vmul.f32 %v1340_v37, %v1334_v25  ;;  %v1342_v0 = vpop.eup %1341 }
 0x40c   : > { %v939_v1 = vmul.f32 32.0, %v1342_v0  ;;  %vm943_vm8 = vweird.f32 %v1342_v0 }
 0x40d   : > { %v868_v41 = vpack.c.bf16 %v867_v38, %v867_v38 }
 0x40e   : > { %v940_v2 = vsub.f32 1.0, %v939_v1 }
 0x410   : > { %v941_v3 = vmul.f32 %v1342_v0, %v940_v2 }
 0x412   : > { %v942_v5 = vadd.f32 %v1342_v0, %v941_v3 }
 0x414   : > { %v944_v6 = vsel %vm943_vm8, %v1342_v0, %v942_v5 }
 0x416   : > { %v870_v39 = vpop.permute.xlu0 %869 }
 0x417   : > { %v875_v40 = vsel %vm673_vm3, %v870_v39, 0 }
 0x418   : > { %884 = vmatpush.bf16.msra.mxu0 %v875_v40 }
 0x41b   : > { %1183 = vmatmul.msk.bf16.vlgmr.msra.gmra.mxu0 %vm633_vm2, %v868_v41 }
 0x47c   : > { %v752_v42 = vpop.f32.mrf.mxu0 }
 0x47d   : > { %v756_v43 = vpack.c.bf16 %v752_v42, %v752_v42 }
 0x47f   : > { %758 = vrot.lane.b32.xlu1 %v756_v43, %s1633_s10  ;;  %s1541_s10 = scalar_lea.hbm %s1540_s3, 8 }
 0x480   : > { %p1542_p1 = scmp.ne.s32.totalorder %s1540_s3, %s1541_s10  ;;  %p1547_p8 = scmp.lt.s32.totalorder %s1545_s5, %s1541_s10 }
 0x482   : > { %p1543_p3 = pnand %p1542_p1, %p1773_p4  ;;  %p1548_p10 = por %p1547_p8, %p1546_p6 }
 0x483   : > { %v819_v44 = vpop.f32.mrf.mxu2 }
 0x484   : > { %v823_v45 = vpack.c.bf16 %v819_v44, %v819_v44  ;;  %v754_v46 = vpop.f32.mrf.mxu0  ;;  %p1544_p5 = pneg %p1543_p3 }
 0x486   : > { %p1549_p11 = pnand %p1548_p10, %p1544_p5 }
 0x487   : > { %825 = vrot.lane.b32.xlu1 %v823_v45, %s1634_s26 }
 0x48b   : > { %v821_v47 = vpop.f32.mrf.mxu2 }
 0x498   : > { %v886_v48 = vpop.f32.mrf.mxu0 }
 0x499   : > { %v890_v49 = vpack.c.bf16 %v886_v48, %v886_v48 }
 0x49b   : > { %892 = vrot.lane.b32.xlu2 %v890_v49, %s1635_s14 }
 0x4a0   : > { %v888_v50 = vpop.f32.mrf.mxu0 }
 0x4f1   : > { %v759_v53 = vpop.permute.xlu1 %758 }
 0x4f2   : > { %762 = vst.msk [vmem:[#allocation3] sm:$0xf] %vm761_vm5, %v759_v53 }
 0x4f5   : > { %v893_v55 = vpop.permute.xlu2 %892 }
 0x4f9   : > { %v826_v54 = vpop.permute.xlu1 %825 }
 0x4fa   : > { %829 = vst.msk [vmem:[#allocation3] sm:$0xf] %vm828_vm6, %v826_v54 }
 0x4fb   : > { %896 = vst.msk [vmem:[#allocation3] sm:$0xf] %vm895_vm7, %v893_v55 }
 0x502   : > { %v897_v56 = vld [vmem:[#allocation3] sm:$0xf] }
 0x503   : > { %1192 = vmatmul.msk.bf16.vlgmr.msra.gmra.mxu1 %vm568_vm0, %v897_v56 }
 0x580   : > { %v930_v58 = vpop.f32.mrf.mxu1 }
 0x581   : > { %v931_v59 = vadd.f32 %v1322_v57, %v930_v58 }
 0x583   : > { %v934_v60 = vadd.f32 %v931_v59, %v1863_v4 }
 0x585   : > { %v935_v61 = vsel %vm568_vm0, %v934_v60, 0.0 }
 0x586   : > { %936 = vadd.xlane.f32.xlu0 %v935_v61 }
 0x588   : > { %v932_v62 = vpop.f32.mrf.mxu1 }
 0x5f9   : > { %v937_v7 = vpop.xlane.xlu0 %936 }
 0x5fa   : > { %v945_v8 = vmul.f32 %v944_v6, %v937_v7 }
 0x5fc   : > { %v946_v9 = vsub.f32 %v934_v60, %v945_v8 }
 0x5fe   : > { %v947_v10 = vmul.f32 %v946_v9, %v946_v9 }
 0x600   : > { %v948_v4 = vsel %vm568_vm0, %v947_v10, 0.0 }
 0x601   : > { %949 = vadd.xlane.f32.xlu1 %v948_v4 }
 0x674   : > { %v950_v11 = vpop.xlane.xlu1 %949 }
 0x675   : > { %v951_v12 = vmul.f32 %v950_v11, %v944_v6 }
 0x677   : > { %v952_v13 = vadd.f32 1e-12, %v951_v12 }
 0x679   : > { %1343 = vrsqrt.f32 %v952_v13  ;;  %vm959_vm10 = vweird.f32 %v952_v13 }
 0x67f   : > { %v1344_v14 = vpop.eup %1343 }
 0x680   : > { %v954_v15 = vmul.f32 %v1344_v14, %v952_v13  ;;  %vm960_vm9 = vweird.f32 %v1344_v14 }
 0x681   : > { %vm961_vm11 = vmor %vm959_vm10, %vm960_vm9 }
 0x682   : > { %v955_v16 = vmul.f32 %v1344_v14, %v954_v15 }
 0x684   : > { %v956_v17 = vmul.f32 0.5, %v955_v16 }
 0x686   : > { %v957_v18 = vsub.f32 1.5, %v956_v17 }
 0x688   : > { %v958_v19 = vmul.f32 %v1344_v14, %v957_v18 }
 0x68a   : > { %v962_v21 = vsel %vm961_vm11, %v1344_v14, %v958_v19 }
 0x68b   : > { %v963_v22 = vmul.f32 %v962_v21, %v946_v9 }
 0x68d   : > { %v968_v25 = vmul.f32 %v1323_v20, %v963_v22 }
 0x68f   : > { %v973_v26 = vadd.f32 %v1324_v23, %v968_v25 }
 0x691   : > { %974 = vst.msk [vmem:[%s541_s20] sm:$0xff] %vm568_vm0, %v973_v26 }
 0x692   : > { %1552 = shalt.err (!%p1549_p11)
}
 0x693   : > { %1221 = dma.vmem_to_hbm [thread:$0]  (%p1773_p4), %s990_s16, 128, %s992_s30, %s976_s29  }
 0x694 PF: > { %s2018_s1 = sld [smem:[#allocation21_spill]] }
 0x695   : > { %s2020_s27 = sld [smem:[#allocation23_spill]] }
 0x69a   : > { %s1003_s13 = sand.u32 1, %s2018_s1  }
 0x69b   : > { %p2021_p12 = scmp.ge.s32.totalorder %s2020_s27, 2  ;;  %s1004_s17 = scalar_lea.sflag [#allocation6], %s1003_s13 }
 0x69d   : > { %p1244_p13 = pnand %p2021_p12, %p1781_p7 }
 0x69f   : > { %p1245_p0 = pneg %p1244_p13 }
 0x6a1   : > { %1594 = dma.done.wait (%p1245_p0), %s1004_s17, 128  }
 0x6a2   : > { %1596 = vsyncadd (%p1245_p0), %s1004_s17, 4294967168  ;;  %s32_s22 = sadd.s32 1, %s2020_s27   ;;  %s2022_s23 = sld [smem:[#allocation22_spill]] }
 0x6a3   : > { %p29_p2 = scmp.ge.s32.totalorder %s32_s22, 4   ;;  %s2023_s19 = sld [smem:[#allocation26_spill]] }
 0x6a4   : > { %s2024_s15 = sld [smem:[#allocation24_spill]]  ;;  %s2025_s17 = smov %s1603_s18 }
 0x6a5   : > { %s2027_s20 = smov %s1615_s21 }
 0x6a6   :  { %31 = sbr.rel (!%p29_p2) target bundleno = 17 (0x11), region = 149 }
 0x6a8   : > { %s2026_s18 = smov %s2022_s23 }
 0x6aa   : > { %s2028_s21 = smov %s2024_s15 }
 0x6ab   :  { %1010 = vsyncpa [#allocation5], 1 }
 0x6ac   :  { %1012 = vsyncpa [#allocation5 + $0x1], 1 }
 0x6ad   :  { %1013 = vsyncpa [#allocation8], 1 }
 0x6ae   :  { %1015 = vsyncpa [#allocation8 + $0x1], 1 }
 0x6af   :  { %1016 = vsyncpa [#allocation11], 1 }
 0x6b0   :  { %1017 = vsyncpa [#allocation14], 1 }
 0x6b1   :  { %1018 = vsyncpa [#allocation6], 1 }
 0x6b2   :  { %1020 = vsyncpa [#allocation6 + $0x1], 1 }

</bundles_post_ra>
